<compile_context>
chip_gen: v7x
topology: tpu7x:2x2x1
jax: 0.10.0
libtpu: 0.0.40
codegen_flags: <defaults>
</compile_context>

<pallas_src>
import functools

import jax
import jax.numpy as jnp
from jax.experimental import pallas as pl
from jax.experimental.pallas import tpu as pltpu


def _round_up(n: int, m: int) -> int:
    return ((n + m - 1) // m) * m


# ----------------------------- kernel -------------------------------------------

def _rmsnorm_kernel(x_ref, w_ref, o_ref, *, eps):
    # Stats in f32 regardless of input dtype (matches torch's x.float()).
    x = x_ref[...].astype(jnp.float32)                       # (tm, H)
    ms = jnp.mean(x * x, axis=-1, keepdims=True)             # (tm, 1)
    inv = jax.lax.rsqrt(ms + eps)                            # EUP rsqrt
    w = w_ref[...].astype(jnp.float32)                       # (1, H), resident
    o_ref[...] = (x * inv * w).astype(o_ref.dtype)


# ----------------------------- wrapper -------------------------------------------

def rmsnorm(x, weight, *, eps=1e-6, block_rows=256):
    """Pallas RMSNorm over the last axis of `x`. Output is float32 (torch promotion)."""
    orig_shape = x.shape
    H = orig_shape[-1]
    T = 1
    for d in orig_shape[:-1]:
        T *= d

    x2 = x.reshape(T, H)
    w2 = weight.reshape(1, H)

    # Row tile: multiple of 8 sublanes, capped at block_rows; pad T if needed.
    tm = min(block_rows, _round_up(T, 8))
    Tp = _round_up(T, tm)
    if Tp != T:
        x2 = jnp.pad(x2, ((0, Tp - T), (0, 0)))

    grid = (Tp // tm,)
    itemsize = jnp.dtype(x.dtype).itemsize

    out = pl.pallas_call(
        functools.partial(_rmsnorm_kernel, eps=float(eps)),
        out_shape=jax.ShapeDtypeStruct((Tp, H), jnp.float32),
        grid=grid,
        in_specs=[
            pl.BlockSpec((tm, H), lambda i: (i, 0)),   # x: streamed per tile
            pl.BlockSpec((1, H), lambda i: (0, 0)),    # weight: stays resident
        ],
        out_specs=pl.BlockSpec((tm, H), lambda i: (i, 0)),
        compiler_params=pltpu.CompilerParams(
            dimension_semantics=("parallel",),
            vmem_limit_bytes=64 * 1024 * 1024,
        ),
        cost_estimate=pl.CostEstimate(
            flops=3 * Tp * H,                 # square + mean-add + scale (approx)
            transcendentals=Tp,               # one rsqrt per row
            bytes_accessed=Tp * H * itemsize + H * itemsize + Tp * H * 4,
        ),
    )(x2, w2)

    if Tp != T:
        out = out[:T]
    return out.reshape(orig_shape[:-1] + (H,))


# ----------------------------- pure-JAX reference --------------------------------

def rmsnorm_ref(x, weight, eps=1e-6):
    xf = x.astype(jnp.float32)
    inv = jax.lax.rsqrt(jnp.mean(xf * xf, axis=-1, keepdims=True) + eps)
    return xf * inv * weight.astype(jnp.float32)


# ----------------------------- main -----------------------------------------------

if __name__ == "__main__":
    key = jax.random.PRNGKey(0)
    kx, kw, kx2, kx3 = jax.random.split(key, 4)

    # Primary test: lane-friendly hidden dim, batch=2, seq=8.
    B, S, H = 2, 8, 256
    x = jax.random.normal(kx, (B, S, H), jnp.float32)
    w = 1.0 + 0.1 * jax.random.normal(kw, (H,), jnp.float32)

    out = rmsnorm(x, w, eps=1e-6)
    out = jax.block_until_ready(out)
    ref = rmsnorm_ref(x, w, eps=1e-6)
    assert out.shape == (B, S, H)
    assert jnp.allclose(out, ref, atol=1e-5, rtol=1e-5), "f32 mismatch vs reference"

    # Odd shapes (exercises row padding; H not a multiple of 128 still legal since
    # the block spans the full last dim).
    x_odd = jax.random.normal(kx2, (3, 5, 160), jnp.float32)
    w_odd = jnp.ones((160,), jnp.float32)
    out_odd = jax.block_until_ready(rmsnorm(x_odd, w_odd))
    assert jnp.allclose(out_odd, rmsnorm_ref(x_odd, w_odd), atol=1e-5, rtol=1e-5)

    # bf16 input path: stats computed in f32 inside the kernel, f32 output (torch promotion).
    x_bf = jax.random.normal(kx3, (B, S, H), jnp.float32).astype(jnp.bfloat16)
    w_bf = w.astype(jnp.bfloat16)
    out_bf = jax.block_until_ready(rmsnorm(x_bf, w_bf))
    assert out_bf.dtype == jnp.float32
    assert jnp.allclose(out_bf, rmsnorm_ref(x_bf, w_bf), atol=1e-2, rtol=1e-2)

    print("KERNEL_OK")
</pallas_src>

<mosaic_0001>
module attributes {stable_mosaic.version = 11 : i64} {
  func.func @_rmsnorm_kernel(%arg0: i32, %arg1: memref<16x256xf32, #tpu.memory_space<vmem>>, %arg2: memref<1x256xf32, #tpu.memory_space<vmem>>, %arg3: memref<16x256xf32, #tpu.memory_space<vmem>>) attributes {dimension_semantics = [#tpu.dimension_semantics<parallel>], iteration_bounds = array<i64: 1>, scalar_prefetch = 0 : i64, scratch_operands = 0 : i64, tpu.core_type = #tpu.core_type<tc>, window_params = [{transform_indices = @transform_0, window_bounds = array<i64: 16, 256>}, {pipeline_mode = #tpu.pipeline_mode<synchronous>, transform_indices = @transform_1, window_bounds = array<i64: 1, 256>}, {transform_indices = @transform_2, window_bounds = array<i64: 16, 256>}]} {
    %c0 = arith.constant 0 : index
    %c0_0 = arith.constant 0 : index
    %0 = vector.load %arg1[%c0, %c0_0] : memref<16x256xf32, #tpu.memory_space<vmem>>, vector<16x256xf32>
    %1 = arith.mulf %0, %0 : vector<16x256xf32>
    %cst = arith.constant dense<0.000000e+00> : vector<16xf32>
    %2 = vector.multi_reduction <add>, %1, %cst [1] : vector<16x256xf32> to vector<16xf32>
    %3 = vector.shape_cast %2 : vector<16xf32> to vector<16x1xf32>
    %cst_1 = arith.constant 2.560000e+02 : f32
    %4 = vector.broadcast %cst_1 : f32 to vector<16x1xf32>
    %5 = arith.divf %3, %4 : vector<16x1xf32>
    %cst_2 = arith.constant 9.99999997E-7 : f32
    %6 = vector.broadcast %cst_2 : f32 to vector<16x1xf32>
    %7 = arith.addf %5, %6 : vector<16x1xf32>
    %8 = math.rsqrt %7 : vector<16x1xf32>
    %c0_3 = arith.constant 0 : index
    %c0_4 = arith.constant 0 : index
    %9 = vector.load %arg2[%c0_3, %c0_4] : memref<1x256xf32, #tpu.memory_space<vmem>>, vector<1x256xf32>
    %10 = vector.broadcast %8 : vector<16x1xf32> to vector<16x256xf32>
    %11 = arith.mulf %0, %10 : vector<16x256xf32>
    %12 = vector.broadcast %9 : vector<1x256xf32> to vector<16x256xf32>
    %13 = arith.mulf %11, %12 : vector<16x256xf32>
    %c0_5 = arith.constant 0 : index
    %c0_6 = arith.constant 0 : index
    %14 = vector.load %arg3[%c0_5, %c0_6] : memref<16x256xf32, #tpu.memory_space<vmem>>, vector<16x256xf32>
    tpu.vector_store %arg3[%c0_5, %c0_6], %13 {strides = array<i32>} : memref<16x256xf32, #tpu.memory_space<vmem>>, vector<16x256xf32>,
    return
  }
  func.func @transform_0(%arg0: i32) -> (i32, i32) {
    %c0_i32 = arith.constant 0 : i32
    %c0_i32_0 = arith.constant 0 : i32
    return %arg0, %c0_i32 : i32, i32
  }
  func.func @transform_1(%arg0: i32) -> (i32, i32) {
    %c0_i32 = arith.constant 0 : i32
    %c0_i32_0 = arith.constant 0 : i32
    %c0_i32_1 = arith.constant 0 : i32
    return %c0_i32, %c0_i32_0 : i32, i32
  }
  func.func @transform_2(%arg0: i32) -> (i32, i32) {
    %c0_i32 = arith.constant 0 : i32
    %c0_i32_0 = arith.constant 0 : i32
    return %arg0, %c0_i32 : i32, i32
  }
}

</mosaic_0001>

<bundles_post_ra>
// kernel: tpu_custom_call.1
= control target key start
LH: loop header
LB: loop body
LE: loop exit
PB: predicated region body
PF: predicated region fallthrough
CT: control target
= control target key end

     0   :  { %7 = vsyncpa [#allocation3], 0  ;;  %s244_s0 = inlined_call_operand.hbm [shape: f32[16,256], index: 0, kind: input, shape index: {}]   ;;  %s245_s1 = inlined_call_operand.hbm [shape: f32[1,256], index: 1, kind: input, shape index: {}]   ;;  %s246_s2 = inlined_call_operand.hbm [shape: f32[16,256], index: 2, kind: output, shape index: {}]  }
   0x1   :  { %8 = vsyncpa [#allocation6], 0 }
   0x2   :  { %9 = vsyncpa [#allocation4], 0  ;;  %s182_s9 = smov [#allocation2]   ;;  %s110_s13 = scalar_lea.hbm %s244_s0, 512 }
   0x3   :  { %s15_s10 = sshll.u32 %s182_s9, 4  ;;  %p111_p0 = scmp.ne.s32.totalorder %s244_s0, %s110_s13  ;;  %s16_s10 = int_to_ptr.vmem [resolvable:$true] %s15_s10 }
   0x4   :  { %p114_p1 = scmp.lt.u32.totalorder %s110_s13, %s244_s0 }
   0x6   :  { %p116_p2 = pnand %p114_p1, %p111_p0 }
   0x8   :  { %119 = shalt.err (!%p116_p2)
}
   0x9   :  { %s120_s18 = scalar_lea.vmem %s16_s10, 512  ;;  %p125_p4 = scmp.lt.s32.totalorder %s16_s10, %s16_s10 }
   0xa   :  { %p121_p3 = scmp.ne.s32.totalorder %s16_s10, %s120_s18  ;;  %p126_p5 = scmp.lt.s32.totalorder %s120_s18, %s120_s18 }
   0xc   :  { %p127_p6 = por %p126_p5, %p125_p4 }
   0xe   :  { %p128_p7 = pnand %p127_p6, %p121_p3 }
  0x10   :  { %131 = shalt.err (!%p128_p7)
}
  0x11   :  { %s183_s19 = smov 256   ;;  %s184_s20 = smov 16  }
  0x12   :  { %21 = dma.hbm_to_vmem [thread:$0]  %s244_s0, 512, %s16_s10, [#allocation3], %s183_s19, %s183_s19, %s184_s20  }
  0x13   :  { %s185_s23 = smov [#allocation5]   ;;  %s132_s27 = scalar_lea.hbm %s245_s1, 32 }
  0x14   :  { %s28_s24 = sshll.u32 %s185_s23, 4  ;;  %p133_p8 = scmp.ne.s32.totalorder %s245_s1, %s132_s27  ;;  %s29_s24 = int_to_ptr.vmem [resolvable:$true] %s28_s24 }
  0x15   :  { %p136_p9 = scmp.lt.u32.totalorder %s132_s27, %s245_s1 }
  0x17   :  { %p138_p10 = pnand %p136_p9, %p133_p8 }
  0x19   :  { %141 = shalt.err (!%p138_p10)
}
  0x1a   :  { %s142_s4 = scalar_lea.vmem %s29_s24, 32  ;;  %p147_p12 = scmp.lt.s32.totalorder %s29_s24, %s29_s24 }
  0x1b   :  { %p143_p11 = scmp.ne.s32.totalorder %s29_s24, %s142_s4  ;;  %p148_p13 = scmp.lt.s32.totalorder %s142_s4, %s142_s4 }
  0x1d   :  { %p149_p0 = por %p148_p13, %p147_p12 }
  0x1f   :  { %p150_p1 = pnand %p149_p0, %p143_p11 }
  0x21   :  { %153 = shalt.err (!%p150_p1)
}
  0x22   :  { %31 = dma.hbm_to_vmem [thread:$0]  %s245_s1, 32, %s29_s24, [#allocation6]  }
  0x23   :  { %176 = dma.done.wait [#allocation3], 512  }
  0x24   :  { %177 = vsyncadd [#allocation3], 4294966784 }
  0x25   :  { %178 = dma.done.wait [#allocation6], 32  }
  0x26   :  { %179 = vsyncadd [#allocation6], 4294967264  ;;  %v38_v0 = vld [vmem:[#allocation2] sm:$0xff]  ;;  %v39_v1 = vld [vmem:[#allocation2 + $0x8] sm:$0xff]  ;;  %v65_v12 = vlaneseq  ;;  %s186_s1 = smov [#allocation7]  }
  0x27   :  { %v40_v2 = vld [vmem:[#allocation2 + $0x10] sm:$0xff]  ;;  %v42_v3 = vmul.f32 %v38_v0, %v38_v0  ;;  %v43_v4 = vmul.f32 %v39_v1, %v39_v1  ;;  %v41_v5 = vld [vmem:[#allocation2 + $0x18] sm:$0xff]  ;;  %v59_v20 = vld [vmem:[#allocation5] sm:$0x3]  ;;  %s88_s6 = sshll.u32 %s186_s1, 4  ;;  %s89_s6 = int_to_ptr.vmem [resolvable:$true] %s88_s6 }
  0x28   :  { %v44_v6 = vmul.f32 %v40_v2, %v40_v2  ;;  %v45_v7 = vmul.f32 %v41_v5, %v41_v5  ;;  %v66_v16 = vshrl.u32 %v65_v12, 7  ;;  %s154_s7 = scalar_lea.vmem %s89_s6, 512  ;;  %p159_p3 = scmp.lt.s32.totalorder %s89_s6, %s89_s6 }
  0x29   :  { %v46_v8 = vadd.f32 %v43_v4, %v42_v3  ;;  %p155_p2 = scmp.ne.s32.totalorder %s89_s6, %s154_s7  ;;  %p160_p4 = scmp.lt.s32.totalorder %s154_s7, %s154_s7 }
  0x2a   :  { %v49_v9 = vadd.f32 %v45_v7, %v44_v6  ;;  %v67_v18 = vsub.s32 0, %v66_v16  ;;  %v71_v19 = vsub.s32 1, %v66_v16 }
  0x2b   :  { %47 = vadd.xlane.f32.xlu0 %v46_v8  ;;  %p161_p5 = por %p160_p4, %p159_p3 }
  0x2c   :  { %v68_v21 = vrot.slane %v59_v20, %v67_v18  ;;  %v72_v22 = vrot.slane %v59_v20, %v71_v19 }
  0x2d   :  { %p162_p6 = pnand %p161_p5, %p155_p2 }
  0x2f   :  { %50 = vadd.xlane.f32.xlu0 %v49_v9 }
  0xb8   :  { %v48_v10 = vpop.xlane.xlu0 %47 }
  0xb9   :  { %v53_v11 = vmul.f32 0.00390625, %v48_v10 }
  0xbb   :  { %v55_v13 = vadd.f32 1e-06, %v53_v11 }
  0xbc   :  { %v51_v14 = vpop.xlane.xlu0 %50 }
  0xbd   :  { %106 = vrsqrt.f32 %v55_v13  ;;  %v54_v15 = vmul.f32 0.00390625, %v51_v14 }
  0xbf   :  { %v56_v17 = vadd.f32 1e-06, %v54_v15 }
  0xc1   :  { %108 = vrsqrt.f32 %v56_v17 }
  0xc7   :  { %v107_v23 = vpop.eup %106 }
  0xc8   :  { %v60_v24 = vmul.f32 %v107_v23, %v38_v0  ;;  %v61_v25 = vmul.f32 %v107_v23, %v39_v1 }
  0xca   :  { %v75_v26 = vmul.f32 %v68_v21, %v60_v24  ;;  %v76_v27 = vmul.f32 %v72_v22, %v61_v25 }
  0xcb   :  { %v109_v28 = vpop.eup %108 }
  0xcc   :  { %v62_v29 = vmul.f32 %v109_v28, %v40_v2  ;;  %v63_v30 = vmul.f32 %v109_v28, %v41_v5  ;;  %79 = vst [vmem:[#allocation7] sm:$0xff] %v75_v26  ;;  %80 = vst [vmem:[#allocation7 + $0x8] sm:$0xff] %v76_v27 }
  0xce   :  { %v77_v31 = vmul.f32 %v68_v21, %v62_v29  ;;  %v78_v32 = vmul.f32 %v72_v22, %v63_v30 }
  0xd0   :  { %81 = vst [vmem:[#allocation7 + $0x10] sm:$0xff] %v77_v31  ;;  %82 = vst [vmem:[#allocation7 + $0x18] sm:$0xff] %v78_v32 }
  0xd1   :  { %165 = shalt.err (!%p162_p6)
}
  0xd2   :  { %s166_s10 = scalar_lea.hbm %s246_s2, 512 }
  0xd3   :  { %p167_p7 = scmp.ne.s32.totalorder %s246_s2, %s166_s10  ;;  %p170_p8 = scmp.lt.u32.totalorder %s166_s10, %s246_s2 }
  0xd5   :  { %p172_p9 = pnand %p170_p8, %p167_p7 }
  0xd7   :  { %175 = shalt.err (!%p172_p9)
}
  0xd8   :  { %94 = dma.vmem_to_hbm [thread:$0]  %s89_s6, 512, %s246_s2, [#allocation4], %s183_s19, %s183_s19, %s184_s20  }
  0xd9   :  { %180 = dma.done.wait [#allocation4], 512  }
  0xda   :  { %181 = vsyncadd [#allocation4], 4294966784 }
  0xdb   :  { %98 = vsyncpa [#allocation3], 1 }
  0xdc   :  { %99 = vsyncpa [#allocation6], 1 }
  0xdd   :  { %100 = vsyncpa [#allocation4], 1 }

</bundles_post_ra>
